<compile_context>
chip_gen: v7x
topology: tpu7x:2x2x1
jax: 0.10.0
libtpu: 0.0.40
codegen_flags: <defaults>
</compile_context>

<pallas_src>
import functools

import jax
import jax.numpy as jnp
from jax.experimental import pallas as pl
from jax.experimental.pallas import tpu as pltpu

_LANES = 128
_TM_MAX = 4096      # rows per block: (4096, 128) f32 = 2 MiB per input block
_ACC_ROWS = 8       # accumulator sublanes (one vreg row-tile)


def _num_tensorcores():
    """Best-effort TensorCore count per chip (perf-only; correctness never depends on it)."""
    try:
        info = pltpu.get_tpu_info()
        for attr in ("num_tensorcores", "tensorcores_per_chip", "num_cores",
                     "cores_per_chip", "core_count"):
            n = getattr(info, attr, None)
            if isinstance(n, int) and 1 <= n <= 8:
                return n
    except Exception:
        pass
    try:
        kind = jax.devices()[0].device_kind.lower()
        if any(t in kind for t in ("v7", "v5p", "v4")):
            return 2
    except Exception:
        pass
    return 1


def _bce_sum_kernel(p_ref, y_ref, out_ref, acc_ref, *, n_elems, tm, acc_rows,
                    blocks_per_core):
    """Accumulate masked BCE terms; write one partial sum per core-split row."""
    c = pl.program_id(0)  # parallel (core-split) axis
    i = pl.program_id(1)  # reduction axis over row blocks

    @pl.when(i == 0)
    def _init():
        acc_ref[...] = jnp.zeros_like(acc_ref)

    # Logical (unclamped) block number and its flat element offset.
    blk = c * blocks_per_core + i
    block_start = blk * (tm * _LANES)
    full_block = block_start + tm * _LANES <= n_elems  # scalar predicate

    p = p_ref[...].astype(jnp.float32)
    y = y_ref[...].astype(jnp.float32)

    def bce(p_, y_):
        # PyTorch BCELoss clamps the log terms at -100.
        log_p = jnp.maximum(jnp.log(p_), jnp.float32(-100.0))
        log_1mp = jnp.maximum(jnp.log1p(-p_), jnp.float32(-100.0))
        # TODO(synk): for hard 0/1 targets a single log(where(y>0.5, p, 1-p)) would halve
        # EUP work, but BCELoss also accepts soft targets, so keep both log terms.
        return -(y_ * log_p + (1.0 - y_) * log_1mp)

    def accumulate(loss):
        if acc_rows == tm:
            acc_ref[...] += loss
        else:
            # Leading-axis tree reduce: lowers to vreg adds on the VALU (no XLU).
            acc_ref[...] += jnp.sum(
                loss.reshape(tm // acc_rows, acc_rows, _LANES), axis=0)

    @pl.when(full_block)
    def _interior():
        # Fast path: full interior block — no iota / mask / select work at all.
        accumulate(bce(p, y))

    @pl.when(jnp.logical_not(full_block))
    def _tail():
        # Ragged last block or duplicated clamped block: mask invalid slots.
        rem = n_elems - block_start  # may be <= 0 for duplicated clamped blocks
        pos = (jax.lax.broadcasted_iota(jnp.int32, (tm, _LANES), 0) * _LANES
               + jax.lax.broadcasted_iota(jnp.int32, (tm, _LANES), 1))
        valid = pos < rem
        # Sanitize BEFORE log/log1p: garbage p would give NaN/Inf inside the logs.
        p_s = jnp.where(valid, p, jnp.float32(0.5))
        loss = jnp.where(valid, bce(p_s, y), jnp.float32(0.0))
        accumulate(loss)

    @pl.when(i == pl.num_programs(1) - 1)
    def _finalize():
        out_ref[0, 0] = jnp.sum(acc_ref[...])


def path_est_cnn_loss(right_y, est_y):
    """BCELoss(est_y, right_y) with 'mean' reduction, computed in Pallas.

    The kernel is HBM-bound; pass bf16 inputs if available (upcast happens
    in-kernel after the VMEM load, halving DMA bytes).
    """
    assert right_y.shape == est_y.shape
    n_elems = est_y.size
    assert n_elems > 0
    # In-kernel flat-index math is int32; keep a safety margin for clamped blocks.
    assert n_elems < 2**31 - 32 * _TM_MAX * _LANES

    p_flat = est_y.reshape(-1)
    y_flat = right_y.reshape(-1)

    # Only pad the sub-128 remainder (rare); common case is a copy-free reshape.
    pad = (-n_elems) % _LANES
    if pad:
        p_flat = jnp.pad(p_flat, (0, pad))
        y_flat = jnp.pad(y_flat, (0, pad))
    rows = (n_elems + pad) // _LANES

    p2 = p_flat.reshape(rows, _LANES)
    y2 = y_flat.reshape(rows, _LANES)

    tm = min(_TM_MAX, rows)            # full-extent block when the input is small
    blocks_total = pl.cdiv(rows, tm)
    n_core = max(1, min(_num_tensorcores(), blocks_total))
    blocks_per_core = pl.cdiv(blocks_total, n_core)
    last_block = blocks_total - 1

    # (8,128) accumulator for the steady state; full-width only for tiny odd-row inputs.
    acc_rows = _ACC_ROWS if tm % _ACC_ROWS == 0 else tm

    def row_block_map(c, i):
        # Clamp so redundant trailing steps (odd block counts) re-address the last
        # real block; their contribution is masked out in-kernel (and the repeated
        # block index means Pallas skips the redundant DMA).
        return (jnp.minimum(c * blocks_per_core + i, last_block), 0)

    tile_spec = pl.BlockSpec((tm, _LANES), row_block_map)

    kernel = functools.partial(
        _bce_sum_kernel, n_elems=n_elems, tm=tm, acc_rows=acc_rows,
        blocks_per_core=blocks_per_core,
    )

    partials = pl.pallas_call(
        kernel,
        out_shape=jax.ShapeDtypeStruct((n_core, 1), jnp.float32),
        grid_spec=pltpu.PrefetchScalarGridSpec(
            num_scalar_prefetch=0,
            grid=(n_core, blocks_per_core),
            in_specs=[tile_spec, tile_spec],
            out_specs=pl.BlockSpec(
                (1, 1), lambda c, i: (c, 0), memory_space=pltpu.SMEM
            ),
            scratch_shapes=[pltpu.VMEM((acc_rows, _LANES), jnp.float32)],
        ),
        compiler_params=pltpu.CompilerParams(
            dimension_semantics=("parallel", "arbitrary")
        ),
    )(p2, y2)

    return (jnp.sum(partials) / jnp.float32(n_elems)).astype(jnp.float32)


def _bce_reference(right_y, est_y):
    p = est_y.astype(jnp.float32)
    y = right_y.astype(jnp.float32)
    log_p = jnp.maximum(jnp.log(p), -100.0)
    log_1mp = jnp.maximum(jnp.log1p(-p), -100.0)
    return jnp.mean(-(y * log_p + (1.0 - y) * log_1mp))


def _check(key, shape):
    k1, k2 = jax.random.split(key)
    est_y = jax.nn.sigmoid(jax.random.normal(k1, shape, dtype=jnp.float32))
    right_y = jax.random.bernoulli(k2, p=0.5, shape=shape).astype(jnp.float32)
    loss = jax.block_until_ready(path_est_cnn_loss(right_y, est_y))
    ref = _bce_reference(right_y, est_y)
    assert jnp.allclose(loss, ref, rtol=1e-4, atol=1e-6), (shape, loss, ref)


if __name__ == "__main__":
    key = jax.random.PRNGKey(0)
    k_small, k_med, k_ragged = jax.random.split(key, 3)

    # Primary small NCHW case: batch=2, channels=4, spatial=16x16.
    _check(k_small, (2, 4, 16, 16))
    # Multi-block / core-split / clamped-redundant-block / partial-last-block path
    # (rows = 8320 > TM=4096 -> blocks_total = 3).
    _check(k_med, (2, 4, 512, 260))
    # Element count not divisible by 128 (pad + in-kernel tail-mask path).
    _check(k_ragged, (2, 3, 5, 7))

    print("KERNEL_OK")
</pallas_src>

<mosaic_0001>
module attributes {stable_mosaic.version = 11 : i64} {
  func.func @_bce_sum_kernel(%arg0: i32, %arg1: i32, %arg2: memref<16x128xf32, #tpu.memory_space<vmem>>, %arg3: memref<16x128xf32, #tpu.memory_space<vmem>>, %arg4: memref<1x1xf32, #tpu.memory_space<smem>>, %arg5: memref<8x128xf32, #tpu.memory_space<vmem>>) attributes {dimension_semantics = [#tpu.dimension_semantics<parallel>, #tpu.dimension_semantics<arbitrary>], iteration_bounds = array<i64: 1, 1>, scalar_prefetch = 0 : i64, scratch_operands = 1 : i64, tpu.core_type = #tpu.core_type<tc>, window_params = [{transform_indices = @transform_0, window_bounds = array<i64: 16, 128>}, {transform_indices = @transform_1, window_bounds = array<i64: 16, 128>}, {transform_indices = @transform_2, window_bounds = array<i64: 1, 1>}]} {
    %c0_i32 = arith.constant 0 : i32
    %0 = arith.cmpi eq, %arg1, %c0_i32 : i32
    %1 = arith.extui %0 : i1 to i32
    %c0_i32_0 = arith.constant 0 : i32
    %2 = arith.cmpi ne, %1, %c0_i32_0 : i32
    scf.if %2 {
      %cst = arith.constant 0.000000e+00 : f32
      %18 = vector.broadcast %cst : f32 to vector<8x128xf32>
      %c0_10 = arith.constant 0 : index
      %c0_11 = arith.constant 0 : index
      %19 = vector.load %arg5[%c0_10, %c0_11] : memref<8x128xf32, #tpu.memory_space<vmem>>, vector<8x128xf32>
      tpu.vector_store %arg5[%c0_10, %c0_11], %18 {strides = array<i32>} : memref<8x128xf32, #tpu.memory_space<vmem>>, vector<8x128xf32>,
    } else {
    }
    %c1_i32 = arith.constant 1 : i32
    %3 = arith.muli %arg0, %c1_i32 : i32
    %4 = arith.addi %3, %arg1 : i32
    %c2048_i32 = arith.constant 2048 : i32
    %5 = arith.muli %4, %c2048_i32 : i32
    %c2048_i32_1 = arith.constant 2048 : i32
    %6 = arith.addi %5, %c2048_i32_1 : i32
    %c2048_i32_2 = arith.constant 2048 : i32
    %7 = arith.cmpi sle, %6, %c2048_i32_2 : i32
    %c0 = arith.constant 0 : index
    %c0_3 = arith.constant 0 : index
    %8 = vector.load %arg2[%c0, %c0_3] : memref<16x128xf32, #tpu.memory_space<vmem>>, vector<16x128xf32>
    %c0_4 = arith.constant 0 : index
    %c0_5 = arith.constant 0 : index
    %9 = vector.load %arg3[%c0_4, %c0_5] : memref<16x128xf32, #tpu.memory_space<vmem>>, vector<16x128xf32>
    %10 = arith.extui %7 : i1 to i32
    %c0_i32_6 = arith.constant 0 : i32
    %11 = arith.cmpi ne, %10, %c0_i32_6 : i32
    scf.if %11 {
      %18 = math.log %8 : vector<16x128xf32>
      %cst = arith.constant -1.000000e+02 : f32
      %19 = vector.broadcast %cst : f32 to vector<16x128xf32>
      %20 = arith.maximumf %18, %19 : vector<16x128xf32>
      %cst_10 = arith.constant 0.000000e+00 : f32
      %21 = vector.broadcast %cst_10 : f32 to vector<16x128xf32>
      %22 = arith.subf %21, %8 : vector<16x128xf32>
      %23 = math.log1p %22 : vector<16x128xf32>
      %cst_11 = arith.constant -1.000000e+02 : f32
      %24 = vector.broadcast %cst_11 : f32 to vector<16x128xf32>
      %25 = arith.maximumf %23, %24 : vector<16x128xf32>
      %26 = arith.mulf %9, %20 : vector<16x128xf32>
      %cst_12 = arith.constant 1.000000e+00 : f32
      %27 = vector.broadcast %cst_12 : f32 to vector<16x128xf32>
      %28 = arith.subf %27, %9 : vector<16x128xf32>
      %29 = arith.mulf %28, %25 : vector<16x128xf32>
      %30 = arith.addf %26, %29 : vector<16x128xf32>
      %cst_13 = arith.constant 0.000000e+00 : f32
      %31 = vector.broadcast %cst_13 : f32 to vector<16x128xf32>
      %32 = arith.subf %31, %30 : vector<16x128xf32>
      %c0_14 = arith.constant 0 : index
      %c0_15 = arith.constant 0 : index
      %33 = vector.load %arg5[%c0_14, %c0_15] : memref<8x128xf32, #tpu.memory_space<vmem>>, vector<8x128xf32>
      %34 = vector.shape_cast %32 : vector<16x128xf32> to vector<2x8x128xf32>
      %cst_16 = arith.constant dense<0.000000e+00> : vector<8x128xf32>
      %35 = vector.multi_reduction <add>, %34, %cst_16 [0] : vector<2x8x128xf32> to vector<8x128xf32>
      %36 = arith.addf %33, %35 : vector<8x128xf32>
      %c0_17 = arith.constant 0 : index
      %c0_18 = arith.constant 0 : index
      %37 = vector.load %arg5[%c0_17, %c0_18] : memref<8x128xf32, #tpu.memory_space<vmem>>, vector<8x128xf32>
      tpu.vector_store %arg5[%c0_17, %c0_18], %36 {strides = array<i32>} : memref<8x128xf32, #tpu.memory_space<vmem>>, vector<8x128xf32>,
    } else {
    }
    %true = arith.constant true
    %12 = arith.xori %7, %true : i1
    %13 = arith.extui %12 : i1 to i32
    %c0_i32_7 = arith.constant 0 : i32
    %14 = arith.cmpi ne, %13, %c0_i32_7 : i32
    scf.if %14 {
      %c2048_i32_10 = arith.constant 2048 : i32
      %18 = arith.subi %c2048_i32_10, %5 : i32
      %19 = tpu.iota {dimensions = array<i32: 0>} : vector<16x128xi32>
      %c128_i32 = arith.constant 128 : i32
      %20 = vector.broadcast %c128_i32 : i32 to vector<16x128xi32>
      %21 = arith.muli %19, %20 : vector<16x128xi32>
      %22 = tpu.iota {dimensions = array<i32: 1>} : vector<16x128xi32>
      %23 = arith.addi %21, %22 : vector<16x128xi32>
      %24 = vector.broadcast %18 : i32 to vector<16x128xi32>
      %25 = arith.cmpi slt, %23, %24 : vector<16x128xi32>
      %cst = arith.constant 5.000000e-01 : f32
      %26 = vector.broadcast %cst : f32 to vector<16x128xf32>
      %27 = arith.select %25, %8, %26 : vector<16x128xi1>, vector<16x128xf32>
      %28 = math.log %27 : vector<16x128xf32>
      %cst_11 = arith.constant -1.000000e+02 : f32
      %29 = vector.broadcast %cst_11 : f32 to vector<16x128xf32>
      %30 = arith.maximumf %28, %29 : vector<16x128xf32>
      %cst_12 = arith.constant 0.000000e+00 : f32
      %31 = vector.broadcast %cst_12 : f32 to vector<16x128xf32>
      %32 = arith.subf %31, %27 : vector<16x128xf32>
      %33 = math.log1p %32 : vector<16x128xf32>
      %cst_13 = arith.constant -1.000000e+02 : f32
      %34 = vector.broadcast %cst_13 : f32 to vector<16x128xf32>
      %35 = arith.maximumf %33, %34 : vector<16x128xf32>
      %36 = arith.mulf %9, %30 : vector<16x128xf32>
      %cst_14 = arith.constant 1.000000e+00 : f32
      %37 = vector.broadcast %cst_14 : f32 to vector<16x128xf32>
      %38 = arith.subf %37, %9 : vector<16x128xf32>
      %39 = arith.mulf %38, %35 : vector<16x128xf32>
      %40 = arith.addf %36, %39 : vector<16x128xf32>
      %cst_15 = arith.constant 0.000000e+00 : f32
      %41 = vector.broadcast %cst_15 : f32 to vector<16x128xf32>
      %42 = arith.subf %41, %40 : vector<16x128xf32>
      %cst_16 = arith.constant 0.000000e+00 : f32
      %43 = vector.broadcast %cst_16 : f32 to vector<16x128xf32>
      %44 = arith.select %25, %42, %43 : vector<16x128xi1>, vector<16x128xf32>
      %c0_17 = arith.constant 0 : index
      %c0_18 = arith.constant 0 : index
      %45 = vector.load %arg5[%c0_17, %c0_18] : memref<8x128xf32, #tpu.memory_space<vmem>>, vector<8x128xf32>
      %46 = vector.shape_cast %44 : vector<16x128xf32> to vector<2x8x128xf32>
      %cst_19 = arith.constant dense<0.000000e+00> : vector<8x128xf32>
      %47 = vector.multi_reduction <add>, %46, %cst_19 [0] : vector<2x8x128xf32> to vector<8x128xf32>
      %48 = arith.addf %45, %47 : vector<8x128xf32>
      %c0_20 = arith.constant 0 : index
      %c0_21 = arith.constant 0 : index
      %49 = vector.load %arg5[%c0_20, %c0_21] : memref<8x128xf32, #tpu.memory_space<vmem>>, vector<8x128xf32>
      tpu.vector_store %arg5[%c0_20, %c0_21], %48 {strides = array<i32>} : memref<8x128xf32, #tpu.memory_space<vmem>>, vector<8x128xf32>,
    } else {
    }
    %c0_i32_8 = arith.constant 0 : i32
    %15 = arith.cmpi eq, %arg1, %c0_i32_8 : i32
    %16 = arith.extui %15 : i1 to i32
    %c0_i32_9 = arith.constant 0 : i32
    %17 = arith.cmpi ne, %16, %c0_i32_9 : i32
    scf.if %17 {
      %c0_10 = arith.constant 0 : index
      %c0_11 = arith.constant 0 : index
      %18 = vector.load %arg5[%c0_10, %c0_11] : memref<8x128xf32, #tpu.memory_space<vmem>>, vector<8x128xf32>
      %19 = vector.shape_cast %18 : vector<8x128xf32> to vector<1x8x128xf32>
      %cst = arith.constant dense<0.000000e+00> : vector<1xf32>
      %20 = vector.multi_reduction <add>, %19, %cst [1, 2] : vector<1x8x128xf32> to vector<1xf32>
      %21 = vector.shape_cast %20 : vector<1xf32> to vector<1x1x1xf32>
      %22 = vector.extract %21[0, 0, 0] : f32 from vector<1x1x1xf32>
      %c0_12 = arith.constant 0 : index
      %c0_13 = arith.constant 0 : index
      %23 = memref.load %arg4[%c0_12, %c0_13] : memref<1x1xf32, #tpu.memory_space<smem>>
      memref.store %22, %arg4[%c0_12, %c0_13] : memref<1x1xf32, #tpu.memory_space<smem>>
    } else {
    }
    return
  }
  func.func @transform_0(%arg0: i32, %arg1: i32) -> (i32, i32) {
    %c1_i32 = arith.constant 1 : i32
    %0 = arith.muli %arg0, %c1_i32 : i32
    %1 = arith.addi %0, %arg1 : i32
    %c0_i32 = arith.constant 0 : i32
    %2 = arith.minsi %1, %c0_i32 : i32
    %c0_i32_0 = arith.constant 0 : i32
    %c0_i32_1 = arith.constant 0 : i32
    return %2, %c0_i32_0 : i32, i32
  }
  func.func @transform_1(%arg0: i32, %arg1: i32) -> (i32, i32) {
    %c1_i32 = arith.constant 1 : i32
    %0 = arith.muli %arg0, %c1_i32 : i32
    %1 = arith.addi %0, %arg1 : i32
    %c0_i32 = arith.constant 0 : i32
    %2 = arith.minsi %1, %c0_i32 : i32
    %c0_i32_0 = arith.constant 0 : i32
    %c0_i32_1 = arith.constant 0 : i32
    return %2, %c0_i32_0 : i32, i32
  }
  func.func @transform_2(%arg0: i32, %arg1: i32) -> (i32, i32) {
    %c0_i32 = arith.constant 0 : i32
    %c0_i32_0 = arith.constant 0 : i32
    return %arg0, %c0_i32 : i32, i32
  }
}

</mosaic_0001>

<bundles_post_ra>
// kernel: tpu_custom_call.1
= control target key start
LH: loop header
LB: loop body
LE: loop exit
PB: predicated region body
PF: predicated region fallthrough
CT: control target
= control target key end

     0   :  { %7 = vsyncpa [#allocation4], 0  ;;  %s346_s0 = inlined_call_operand.hbm [shape: f32[16,128], index: 0, kind: input, shape index: {}]   ;;  %s347_s1 = inlined_call_operand.hbm [shape: f32[16,128], index: 1, kind: input, shape index: {}]   ;;  %s348_s2 = inlined_call_operand.hbm [shape: f32[1,1], index: 2, kind: output, shape index: {}]  }
   0x1   :  { %8 = vsyncpa [#allocation7], 0 }
   0x2   :  { %9 = vsyncpa [#allocation5], 0  ;;  %s290_s9 = smov [#allocation3]   ;;  %s230_s13 = scalar_lea.hbm %s346_s0, 256 }
   0x3   :  { %s21_s10 = sshll.u32 %s290_s9, 4  ;;  %p231_p0 = scmp.ne.s32.totalorder %s346_s0, %s230_s13  ;;  %s22_s10 = int_to_ptr.vmem [resolvable:$true] %s21_s10 }
   0x4   :  { %p234_p1 = scmp.lt.u32.totalorder %s230_s13, %s346_s0 }
   0x6   :  { %p236_p2 = pnand %p234_p1, %p231_p0 }
   0x8   :  { %239 = shalt.err (!%p236_p2)
}
   0x9   :  { %s240_s18 = scalar_lea.vmem %s22_s10, 256  ;;  %p245_p4 = scmp.lt.s32.totalorder %s22_s10, %s22_s10 }
   0xa   :  { %p241_p3 = scmp.ne.s32.totalorder %s22_s10, %s240_s18  ;;  %p246_p5 = scmp.lt.s32.totalorder %s240_s18, %s240_s18 }
   0xc   :  { %p247_p6 = por %p246_p5, %p245_p4 }
   0xe   :  { %p248_p7 = pnand %p247_p6, %p241_p3 }
  0x10   :  { %251 = shalt.err (!%p248_p7)
}
  0x11   :  { %s291_s19 = smov 128   ;;  %s292_s20 = smov 8  }
  0x12   :  { %27 = dma.hbm_to_vmem [thread:$0]  %s346_s0, 256, %s22_s10, [#allocation4], %s291_s19, %s291_s19, %s292_s20  }
  0x13   :  { %s293_s23 = smov [#allocation6]   ;;  %s252_s27 = scalar_lea.hbm %s347_s1, 256 }
  0x14   :  { %s39_s24 = sshll.u32 %s293_s23, 4  ;;  %p253_p8 = scmp.ne.s32.totalorder %s347_s1, %s252_s27  ;;  %s40_s24 = int_to_ptr.vmem [resolvable:$true] %s39_s24 }
  0x15   :  { %p256_p9 = scmp.lt.u32.totalorder %s252_s27, %s347_s1 }
  0x17   :  { %p258_p10 = pnand %p256_p9, %p253_p8 }
  0x19   :  { %261 = shalt.err (!%p258_p10)
}
  0x1a   :  { %s262_s4 = scalar_lea.vmem %s40_s24, 256  ;;  %p267_p12 = scmp.lt.s32.totalorder %s40_s24, %s40_s24 }
  0x1b   :  { %p263_p11 = scmp.ne.s32.totalorder %s40_s24, %s262_s4  ;;  %p268_p13 = scmp.lt.s32.totalorder %s262_s4, %s262_s4 }
  0x1d   :  { %p269_p0 = por %p268_p13, %p267_p12 }
  0x1f   :  { %p270_p1 = pnand %p269_p0, %p263_p11 }
  0x21   :  { %273 = shalt.err (!%p270_p1)
}
  0x22   :  { %45 = dma.hbm_to_vmem [thread:$0]  %s347_s1, 256, %s40_s24, [#allocation7], %s291_s19, %s291_s19, %s292_s20  }
  0x23   :  { %284 = dma.done.wait [#allocation4], 256  }
  0x24   :  { %285 = vsyncadd [#allocation4], 4294967040 }
  0x25   :  { %286 = dma.done.wait [#allocation7], 256  }
  0x26   :  { %287 = vsyncadd [#allocation7], 4294967040  ;;  %v69_v0 = vld [vmem:[#allocation3] sm:$0xff]  ;;  %v70_v1 = vld [vmem:[#allocation3 + $0x8] sm:$0xff]  ;;  %s274_s8 = scalar_lea.hbm %s348_s2, 16 }
  0x27   :  { %222 = vlog2.f32 %v69_v0  ;;  %v82_v2 = vsub.f32 0.0, %v69_v0  ;;  %v83_v3 = vsub.f32 0.0, %v70_v1  ;;  %v71_v16 = vld [vmem:[#allocation6] sm:$0xff]  ;;  %v72_v19 = vld [vmem:[#allocation6 + $0x8] sm:$0xff]  ;;  %p275_p2 = scmp.ne.s32.totalorder %s348_s2, %s274_s8  ;;  %p278_p3 = scmp.lt.u32.totalorder %s274_s8, %s348_s2 }
  0x28   :  { %224 = vlog2.f32 %v70_v1  ;;  %v106_v26 = vsub.f32 1.0, %v71_v16  ;;  %v107_v28 = vsub.f32 1.0, %v72_v19 }
  0x29   :  { %v84_v4 = vadd.f32 1.0, %v82_v2  ;;  %v93_v5 = vadd.f32 1.0, %v83_v3  ;;  %v87_v6 = vmul.f32 -0.5, %v82_v2  ;;  %v96_v7 = vmul.f32 -0.5, %v83_v3  ;;  %p280_p4 = pnand %p278_p3, %p275_p2 }
  0x2a   :  { %v90_v10 = vand.u32 2147483647, %v82_v2  ;;  %v99_v14 = vand.u32 2147483647, %v83_v3 }
  0x2b   :  { %226 = vlog2.f32 %v84_v4  ;;  %v88_v8 = vadd.f32 1.0, %v87_v6  ;;  %v97_v11 = vadd.f32 1.0, %v96_v7 }
  0x2c   :  { %228 = vlog2.f32 %v93_v5  ;;  %vm91_vm0 = vcmp.lt.f32.partialorder %v90_v10, 0.0004427343  ;;  %vm100_vm1 = vcmp.lt.f32.partialorder %v99_v14, 0.0004427343 }
  0x2d   :  { %v89_v17 = vmul.f32 %v88_v8, %v82_v2  ;;  %v98_v21 = vmul.f32 %v97_v11, %v83_v3 }
  0x31   :  { %v223_v9 = vpop.eup %222 }
  0x32   :  { %v225_v12 = vpop.eup %224  ;;  %v77_v13 = vmul.f32 0.6931472, %v223_v9 }
  0x33   :  { %v79_v15 = vmul.f32 0.6931472, %v225_v12 }
  0x34   :  { %v80_v20 = vmax.f32 %v77_v13, -100.0 }
  0x35   :  { %v227_v18 = vpop.eup %226  ;;  %v81_v23 = vmax.f32 %v79_v15, -100.0 }
  0x36   :  { %v229_v22 = vpop.eup %228  ;;  %v86_v24 = vmul.f32 0.6931472, %v227_v18  ;;  %v104_v31 = vmul.f32 %v80_v20, %v71_v16 }
  0x37   :  { %v95_v25 = vmul.f32 0.6931472, %v229_v22  ;;  %v105_v33 = vmul.f32 %v81_v23, %v72_v19 }
  0x38   :  { %v92_v27 = vsel %vm91_vm0, %v89_v17, %v86_v24 }
  0x39   :  { %v101_v29 = vsel %vm100_vm1, %v98_v21, %v95_v25  ;;  %v102_v30 = vmax.f32 %v92_v27, -100.0 }
  0x3a   :  { %v103_v32 = vmax.f32 %v101_v29, -100.0 }
  0x3b   :  { %v108_v34 = vmul.f32 %v106_v26, %v102_v30 }
  0x3c   :  { %v109_v35 = vmul.f32 %v107_v28, %v103_v32 }
  0x3d   :  { %v110_v36 = vadd.f32 %v108_v34, %v104_v31 }
  0x3e   :  { %v111_v37 = vadd.f32 %v109_v35, %v105_v33 }
  0x3f   :  { %v112_v38 = vsub.f32 0.0, %v110_v36 }
  0x40   :  { %v113_v39 = vsub.f32 0.0, %v111_v37 }
  0x42   :  { %v115_v40 = vadd.f32 %v113_v39, %v112_v38 }
  0x44   :  { %185 = vadd.xlane.f32.xlu0 %v115_v40 }
  0xd1   :  { %v186_v41 = vpop.xlane.xlu0 %185 }
  0xd2   :  { %v187_v42 = vrot.slane %v186_v41, 4 }
  0xd4   :  { %v188_v43 = vadd.f32 %v187_v42, %v186_v41 }
  0xd6   :  { %v189_v44 = vrot.slane %v188_v43, 2 }
  0xd8   :  { %v190_v45 = vadd.f32 %v189_v44, %v188_v43 }
  0xda   :  { %v191_v46 = vrot.slane %v190_v45, 1 }
  0xdc   :  { %v192_v47 = vadd.f32 %v191_v46, %v190_v45 }
  0xde   :  { %215 = vpush %v192_v47 }
 0x10f   :  { %s216_s1 = spop %215 }
 0x110   :  { %195 = sst [smem:[#allocation8]] %s216_s1 }
 0x111   :  { %283 = shalt.err (!%p280_p4)
}
 0x112   :  { %s294_s13 = smov [#allocation8]  }
 0x113   :  { %203 = dma.smem_to_hbm %s294_s13, 16, %s348_s2, [#allocation5]  }
 0x114   :  { %288 = dma.done.wait [#allocation5], 16  }
 0x115   :  { %289 = vsyncadd [#allocation5], 4294967280 }
 0x116   :  { %207 = sfence }
 0x117   :  { %208 = vsyncpa [#allocation4], 1 }
 0x118   :  { %209 = vsyncpa [#allocation7], 1 }
 0x119   :  { %210 = vsyncpa [#allocation5], 1 }

</bundles_post_ra>
